<compile_context>
chip_gen: v5e
topology: v5e:2x2
jax: 0.10.0
libtpu: 0.0.40
codegen_flags: <defaults>
</compile_context>

<pallas_src>
import functools
import math

import jax
import jax.numpy as jnp
from jax.experimental import pallas as pl
from jax.experimental.pallas import tpu as pltpu


def _vmem_limits():
    """(vmem_limit_bytes, x_stream_budget_bytes) adapted to the chip."""
    try:
        cap = int(pltpu.get_tpu_info().vmem_capacity_bytes)
    except Exception:
        cap = 64 * 1024 * 1024          # conservative (v7x) fallback
    limit = min(100 * 1024 * 1024, (cap * 3) // 4)   # ~96 MiB v5e/v6e, 48 MiB v7x
    return limit, limit // 2                          # x stream gets half


def _largest_divisor_at_most(n, cap):
    cap = max(1, min(int(cap), n))
    for c in range(cap, 0, -1):
        if n % c == 0:
            return c
    return 1


def _fused_kernel(x_ref, q_ref, o_ref, *, scale):
    """One batch tile, full sequence resident: fused log-softmax pooling."""
    tb, s, d = x_ref.shape
    # Fold 1/sqrt(D) into the query once (D elements, not TB*S).
    q = q_ref[...].astype(jnp.float32) * scale                  # (1, D)
    qb = jnp.broadcast_to(q.reshape(1, 1, d), (tb, 1, d))       # (TB, 1, D)

    # Pass 1: scores on the MXU (batched 'bqd,bkd->bqk' with q-len 1).
    x = x_ref[...].astype(jnp.float32)                          # (TB, S, D)
    scores = jax.lax.dot_general(
        qb, x,
        dimension_numbers=(((2,), (2,)), ((0,), (0,))),
        precision=jax.lax.Precision.HIGHEST,
        preferred_element_type=jnp.float32)                     # (TB, 1, S)

    # Max-stabilized log-softmax over the sequence (lane) axis.
    m = jnp.max(scores, axis=-1, keepdims=True)                 # (TB, 1, 1)
    z = scores - m
    lse = jnp.log(jnp.sum(jnp.exp(z), axis=-1, keepdims=True))  # (TB, 1, 1)
    logw = z - lse                                              # (TB, 1, S)

    # Pass 2: weighted sum on the MXU; re-read x from VMEM so the full
    # (TB,S,D) value is not kept live across the softmax (vreg pressure).
    x2 = x_ref[...].astype(jnp.float32)
    out = jax.lax.dot_general(
        logw, x2,
        dimension_numbers=(((2,), (1,)), ((0,), (0,))),
        precision=jax.lax.Precision.HIGHEST,
        preferred_element_type=jnp.float32)                     # (TB, 1, D)
    o_ref[...] = out.astype(o_ref.dtype)


def _stream_kernel(x_ref, q_ref, o_ref, m_sc, l_sc, xs_sc, sx_sc, *, scale):
    """S-streamed fallback: online logsumexp + linear accumulators.

    out[b,:] = sum_s x[b,s,:]*scores[b,s] - logsumexp_b(scores) * sum_s x[b,s,:]
    which equals sum_s x[b,s,:] * log_softmax(scores)[b,s].
    """
    j = pl.program_id(1)
    tb, ts, d = x_ref.shape

    @pl.when(j == 0)
    def _():
        m_sc[...] = jnp.full_like(m_sc, -jnp.inf)
        l_sc[...] = jnp.zeros_like(l_sc)
        xs_sc[...] = jnp.zeros_like(xs_sc)
        sx_sc[...] = jnp.zeros_like(sx_sc)

    q = q_ref[...].astype(jnp.float32) * scale
    qb = jnp.broadcast_to(q.reshape(1, 1, d), (tb, 1, d))

    x = x_ref[...].astype(jnp.float32)                          # (TB, TS, D)
    scores = jax.lax.dot_general(
        qb, x,
        dimension_numbers=(((2,), (2,)), ((0,), (0,))),
        precision=jax.lax.Precision.HIGHEST,
        preferred_element_type=jnp.float32)                     # (TB, 1, TS)

    # Online logsumexp over the full sequence.
    m_prev = m_sc[...]
    m_new = jnp.maximum(m_prev, jnp.max(scores, axis=-1, keepdims=True))
    l_sc[...] = (l_sc[...] * jnp.exp(m_prev - m_new)
                 + jnp.sum(jnp.exp(scores - m_new), axis=-1, keepdims=True))
    m_sc[...] = m_new

    # Linear accumulators (no stabilization needed); re-read x from VMEM.
    x2 = x_ref[...].astype(jnp.float32)
    xs_sc[...] += jax.lax.dot_general(
        scores, x2,
        dimension_numbers=(((2,), (1,)), ((0,), (0,))),
        precision=jax.lax.Precision.HIGHEST,
        preferred_element_type=jnp.float32)                     # (TB, 1, D)
    sx_sc[...] += jnp.sum(x2, axis=1, keepdims=True)            # (TB, 1, D)

    @pl.when(j == pl.num_programs(1) - 1)
    def _():
        lse = m_sc[...] + jnp.log(l_sc[...])                    # (TB, 1, 1)
        out = xs_sc[...] - lse * sx_sc[...]                     # (TB, 1, D)
        o_ref[...] = out.astype(o_ref.dtype)


def attention(lstm_output, query, *, block_b=None, block_s=None):
    """lstm_output: (B, S, D); query: (D,). Returns (B, D)."""
    B, S, D = lstm_output.shape
    assert query.shape == (D,)
    scale = 1.0 / math.sqrt(D)
    itemsize = jnp.dtype(lstm_output.dtype).itemsize
    q2 = query.reshape(1, D)

    vmem_limit, x_budget = _vmem_limits()

    # --- sequence tile: full S when the double-buffered row tile fits --------
    if block_s is None:
        if 2 * S * D * itemsize <= x_budget:
            block_s = S
        else:
            cap_s = max(8, x_budget // (2 * 8 * D * itemsize))
            cands = [c for c in range(int(cap_s), 7, -1)
                     if S % c == 0 and c % 8 == 0]
            block_s = cands[0] if cands else S
    assert block_s == S or (S % block_s == 0 and block_s % 8 == 0)

    # --- batch tile from the VMEM byte budget (2x = double buffering) --------
    if block_b is None:
        per_row = 2 * block_s * D * itemsize
        max_tb = max(1, x_budget // per_row)
        # keep >=2 (ideally >=8) steps on the parallel batch axis: both v7x
        # TensorCores get work and the DMA pipeline has stages.
        if B >= 16:
            cap = B // 8
        elif B >= 2:
            cap = B // 2
        else:
            cap = 1
        block_b = _largest_divisor_at_most(B, min(max_tb, cap))
    assert B % block_b == 0

    grid_b = B // block_b
    out_shape = jax.ShapeDtypeStruct((B, 1, D), lstm_output.dtype)

    if block_s == S:
        kernel = functools.partial(_fused_kernel, scale=scale)
        grid = (grid_b,)
        in_specs = [
            pl.BlockSpec((block_b, S, D), lambda i: (i, 0, 0)),
            pl.BlockSpec((1, D), lambda i: (0, 0)),     # query: VMEM-resident
        ]
        out_specs = pl.BlockSpec((block_b, 1, D), lambda i: (i, 0, 0))
        scratch_shapes = []
        dims = ("parallel",)
    else:
        kernel = functools.partial(_stream_kernel, scale=scale)
        grid = (grid_b, S // block_s)
        in_specs = [
            pl.BlockSpec((block_b, block_s, D), lambda i, j: (i, j, 0)),
            pl.BlockSpec((1, D), lambda i, j: (0, 0)),
        ]
        out_specs = pl.BlockSpec((block_b, 1, D), lambda i, j: (i, 0, 0))
        scratch_shapes = [
            pltpu.VMEM((block_b, 1, 1), jnp.float32),   # running max
            pltpu.VMEM((block_b, 1, 1), jnp.float32),   # running sum-exp
            pltpu.VMEM((block_b, 1, D), jnp.float32),   # sum_s x*scores
            pltpu.VMEM((block_b, 1, D), jnp.float32),   # sum_s x
        ]
        dims = ("parallel", "arbitrary")

    out = pl.pallas_call(
        kernel,
        out_shape=out_shape,
        grid_spec=pltpu.PrefetchScalarGridSpec(
            num_scalar_prefetch=0,
            grid=grid,
            in_specs=in_specs,
            out_specs=out_specs,
            scratch_shapes=scratch_shapes,
        ),
        compiler_params=pltpu.CompilerParams(
            dimension_semantics=dims,
            vmem_limit_bytes=vmem_limit,
        ),
    )(lstm_output, q2)
    return out.reshape(B, D)


def reference(lstm_output, query):
    D = lstm_output.shape[-1]
    scores = jnp.einsum("bsd,d->bs", lstm_output, query) / (D ** 0.5)
    weights = jax.nn.log_softmax(scores, axis=1)[:, :, None]
    return jnp.sum(lstm_output * weights, axis=1)


if __name__ == "__main__":
    B, S, D = 2, 8, 32   # batch, sequence length, input_dim

    key = jax.random.PRNGKey(0)
    k_x, k_q, k_x2 = jax.random.split(key, 3)

    lstm_output = jax.random.normal(k_x, (B, S, D), dtype=jnp.float32)
    query = jax.random.normal(k_q, (D,), dtype=jnp.float32)   # torch.randn(input_dim)

    # Primary (fused, batch-streamed) path.
    out = attention(lstm_output, query)
    jax.block_until_ready(out)
    ref = reference(lstm_output, query)
    assert out.shape == (B, D)
    assert jnp.allclose(out, ref, atol=1e-5, rtol=1e-5), (
        float(jnp.max(jnp.abs(out - ref))))

    # Also exercise the S-streamed (online-logsumexp) fallback path.
    B2, S2 = 4, 16
    x_big = jax.random.normal(k_x2, (B2, S2, D), dtype=jnp.float32)
    out2 = attention(x_big, query, block_s=8)
    jax.block_until_ready(out2)
    ref2 = reference(x_big, query)
    assert out2.shape == (B2, D)
    assert jnp.allclose(out2, ref2, atol=1e-5, rtol=1e-5), (
        float(jnp.max(jnp.abs(out2 - ref2))))

    print("KERNEL_OK")
</pallas_src>

<mosaic_0001>
module attributes {stable_mosaic.version = 11 : i64} {
  func.func @_fused_kernel(%arg0: i32, %arg1: memref<1x8x32xf32, #tpu.memory_space<vmem>>, %arg2: memref<1x32xf32, #tpu.memory_space<vmem>>, %arg3: memref<1x1x32xf32, #tpu.memory_space<vmem>>) attributes {dimension_semantics = [#tpu.dimension_semantics<parallel>], iteration_bounds = array<i64: 2>, scalar_prefetch = 0 : i64, scratch_operands = 0 : i64, tpu.core_type = #tpu.core_type<tc>, window_params = [{transform_indices = @transform_0, window_bounds = array<i64: 1, 8, 32>}, {pipeline_mode = #tpu.pipeline_mode<synchronous>, transform_indices = @transform_1, window_bounds = array<i64: 1, 32>}, {transform_indices = @transform_2, window_bounds = array<i64: 1, 1, 32>}]} {
    %c0 = arith.constant 0 : index
    %c0_0 = arith.constant 0 : index
    %0 = vector.load %arg2[%c0, %c0_0] : memref<1x32xf32, #tpu.memory_space<vmem>>, vector<1x32xf32>
    %cst = arith.constant 0.176776692 : f32
    %1 = vector.broadcast %cst : f32 to vector<1x32xf32>
    %2 = arith.mulf %0, %1 : vector<1x32xf32>
    %3 = vector.shape_cast %2 : vector<1x32xf32> to vector<1x1x32xf32>
    %c0_1 = arith.constant 0 : index
    %c0_2 = arith.constant 0 : index
    %c0_3 = arith.constant 0 : index
    %4 = vector.load %arg1[%c0_1, %c0_2, %c0_3] : memref<1x8x32xf32, #tpu.memory_space<vmem>>, vector<1x8x32xf32>
    %cst_4 = arith.constant dense<0.000000e+00> : vector<1x1x8xf32>
    %5 = tpu.matmul %3, %4, %cst_4 {dimension_numbers = #tpu.dot_dimension_numbers<[2], [2], [1], [1], [0, 0, 0, 1, 1, 1], [0], [0]>, precision = #tpu.contract_precision<fp32>} : vector<1x1x32xf32>, vector<1x8x32xf32>, vector<1x1x8xf32> -> vector<1x1x8xf32>
    %cst_5 = arith.constant dense<0xFF800000> : vector<1x1xf32>
    %6 = vector.multi_reduction <maximumf>, %5, %cst_5 [2] : vector<1x1x8xf32> to vector<1x1xf32>
    %7 = vector.shape_cast %6 : vector<1x1xf32> to vector<1x1x1xf32>
    %8 = vector.broadcast %7 : vector<1x1x1xf32> to vector<1x1x8xf32>
    %9 = arith.subf %5, %8 : vector<1x1x8xf32>
    %10 = math.exp %9 : vector<1x1x8xf32>
    %cst_6 = arith.constant dense<0.000000e+00> : vector<1x1xf32>
    %11 = vector.multi_reduction <add>, %10, %cst_6 [2] : vector<1x1x8xf32> to vector<1x1xf32>
    %12 = vector.shape_cast %11 : vector<1x1xf32> to vector<1x1x1xf32>
    %13 = math.log %12 : vector<1x1x1xf32>
    %14 = vector.broadcast %13 : vector<1x1x1xf32> to vector<1x1x8xf32>
    %15 = arith.subf %9, %14 : vector<1x1x8xf32>
    %c0_7 = arith.constant 0 : index
    %c0_8 = arith.constant 0 : index
    %c0_9 = arith.constant 0 : index
    %16 = vector.load %arg1[%c0_7, %c0_8, %c0_9] : memref<1x8x32xf32, #tpu.memory_space<vmem>>, vector<1x8x32xf32>
    %cst_10 = arith.constant dense<0.000000e+00> : vector<1x1x32xf32>
    %17 = tpu.matmul %15, %16, %cst_10 {dimension_numbers = #tpu.dot_dimension_numbers<[2], [1], [1], [2], [0, 0, 0, 1, 1, 2], [0], [0]>, precision = #tpu.contract_precision<fp32>} : vector<1x1x8xf32>, vector<1x8x32xf32>, vector<1x1x32xf32> -> vector<1x1x32xf32>
    %c0_11 = arith.constant 0 : index
    %c0_12 = arith.constant 0 : index
    %c0_13 = arith.constant 0 : index
    %18 = vector.load %arg3[%c0_11, %c0_12, %c0_13] : memref<1x1x32xf32, #tpu.memory_space<vmem>>, vector<1x1x32xf32>
    tpu.vector_store %arg3[%c0_11, %c0_12, %c0_13], %17 {strides = array<i32>} : memref<1x1x32xf32, #tpu.memory_space<vmem>>, vector<1x1x32xf32>,
    return
  }
  func.func @transform_0(%arg0: i32) -> (i32, i32, i32) {
    %c0_i32 = arith.constant 0 : i32
    %c0_i32_0 = arith.constant 0 : i32
    %c0_i32_1 = arith.constant 0 : i32
    return %arg0, %c0_i32, %c0_i32_0 : i32, i32, i32
  }
  func.func @transform_1(%arg0: i32) -> (i32, i32) {
    %c0_i32 = arith.constant 0 : i32
    %c0_i32_0 = arith.constant 0 : i32
    %c0_i32_1 = arith.constant 0 : i32
    return %c0_i32, %c0_i32_0 : i32, i32
  }
  func.func @transform_2(%arg0: i32) -> (i32, i32, i32) {
    %c0_i32 = arith.constant 0 : i32
    %c0_i32_0 = arith.constant 0 : i32
    %c0_i32_1 = arith.constant 0 : i32
    return %arg0, %c0_i32, %c0_i32_0 : i32, i32, i32
  }
}

</mosaic_0001>

<bundles_post_ra>
// kernel: tpu_custom_call.1
= control target key start
LH: loop header
LB: loop body
LE: loop exit
PB: predicated region body
PF: predicated region fallthrough
CT: control target
= control target key end

     0   :  { %7 = vsyncpa [#allocation3], 0  ;;  %s944_s0 = inlined_call_operand.hbm [shape: f32[2,8,32], index: 0, kind: input, shape index: {}]   ;;  %s945_s1 = inlined_call_operand.hbm [shape: f32[1,32], index: 1, kind: input, shape index: {}]   ;;  %s946_s2 = inlined_call_operand.hbm [shape: f32[2,1,32], index: 2, kind: output, shape index: {}]  }
   0x1   :  { %9 = vsyncpa [#allocation3 + $0x1], 0 }
   0x2   :  { %10 = vsyncpa [#allocation6], 0 }
   0x3   :  { %11 = vsyncpa [#allocation4], 0 }
   0x4   :  { %13 = vsyncpa [#allocation4 + $0x1], 0  ;;  %s805_s9 = smov 0   ;;  %s807_s10 = smov 0  }
   0x5   :  { %s809_s11 = smov 0   ;;  %s811_s12 = smov 0  }
   0x6 LB: > { %s826_s13 = sadd.s32 4294967295, %s787_s12   ;;  %s585_s14 = sadd.s32 4294967294, %s787_s12   ;;  %s787_s12 = sphi %s811_s12, %s956_s12   ;;  %s783_s11 = sphi %s809_s11, %s955_s11   ;;  %s779_s10 = sphi %s807_s10, %s954_s10   ;;  %s775_s9 = sphi %s805_s9, %s953_s9  }
   0x7   : > { %p39_p0 = scmp.ne.s32.totalorder %s779_s10, %s775_s9  ;;  %p40_p1 = scmp.eq.s32.totalorder %s826_s13, 0 }
   0x8   : > { %p84_p2 = scmp.eq.s32.totalorder %s826_s13, 1  ;;  %p90_p3 = scmp.eq.s32.totalorder %s585_s14, 1 }
   0x9   : > { %p835_p4 = por %p40_p1, %p39_p0  ;;  %p586_p5 = scmp.ge.s32.totalorder %s787_s12, 1 }
   0xa   : > { %p840_p6 = por %p90_p3, %p39_p0  ;;  %p97_p7 = scmp.lt.s32.totalorder %s787_s12, 3 }
   0xb   : > { %s109_s19 = sshll.u32 %s945_s1, 4  ;;  %s789_s21 = smov [#allocation5]   ;;  %s110_s19 = int_to_ptr.hbm [resolvable:$true] %s109_s19 }
   0xc   : > { %p848_p8 = pnand %p586_p5, %p97_p7  ;;  %s111_s22 = sshll.u32 %s789_s21, 4  ;;  %s112_s22 = int_to_ptr.vmem [resolvable:$true] %s111_s22 }
   0xd   : > { %s858_s23 = sadd.s32 1, %s787_s12   ;;  %s26_s24 = sadd.s32 1, %s783_s11 }
   0xe   : > { %p604_p10 = pneg %p848_p8  ;;  %s23_s25 = ssub.s32 %s787_s12, %s858_s23 }
   0xf   : > { %p24_p12 = scmp.eq.s32.totalorder %s23_s25, 0  ;;  %p33_p13 = scmp.ne.s32.totalorder %s783_s11, %s779_s10 }
  0x10   : > { %p605_p11 = pnand %p604_p10, %p40_p1  ;;  %p34_p0 = scmp.eq.s32.totalorder %s787_s12, 0 }
  0x11   : > { %s867_s26 = scalar_select %p24_p12, %s783_s11, %s26_s24  }
  0x12   : > { %607 = dma.hbm_to_vmem [thread:$0]  (!%p605_p11), %s110_s19, 16, %s112_s22, [#allocation6]  }
  0x13   : > { %p871_p3 = por %p84_p2, %p33_p13  ;;  %p617_p5 = scmp.lt.s32.totalorder %s787_s12, 2 }
  0x14   : > { %s122_s28 = sand.u32 1, %s783_s11   ;;  %s590_s29 = sshll.u32 %s787_s12, 3 }
  0x15   : > { %p35_p7 = por %p34_p0, %p33_p13  ;;  %s589_s30 = sshll.u32 %s122_s28, 3 }
  0x16   : > { %s130_s5 = scalar_lea.hbm %s944_s0, %s590_s29  ;;  %s126_s7 = scalar_lea.vmem [#allocation2], %s589_s30 }
  0x17   : > { %s132_s6 = sshll.u32 %s130_s5, 4  ;;  %s134_s8 = sshll.u32 %s126_s7, 4  ;;  %s133_s6 = int_to_ptr.hbm [resolvable:$true] %s132_s6  ;;  %s135_s8 = int_to_ptr.vmem [resolvable:$true] %s134_s8 }
  0x18   : > { %p881_p10 = pnand %p617_p5, %p35_p7  ;;  %s123_s17 = scalar_lea.sflag [#allocation3], %s122_s28 }
  0x19   : > { %s687_s18 = sshra.s32 %s133_s6, 4  ;;  %s694_s24 = scalar_lea.hbm %s944_s0, 16  ;;  %s688_s18 = int_to_ptr.hbm [resolvable:$true] %s687_s18 }
  0x1a   : > { %s689_s19 = scalar_lea.hbm %s688_s18, 8  ;;  %p691_p11 = pneg %p881_p10 }
  0x1b   : > { %p690_p2 = scmp.ne.s32.totalorder %s688_s18, %s689_s19  ;;  %p695_p0 = scmp.lt.s32.totalorder %s688_s18, %s944_s0 }
  0x1c   : > { %p696_p5 = scmp.lt.s32.totalorder %s694_s24, %s689_s19 }
  0x1d   : > { %p692_p12 = pnand %p691_p11, %p690_p2 }
  0x1e   : > { %p697_p7 = por %p696_p5, %p695_p0 }
  0x1f   : > { %p693_p13 = pneg %p692_p12 }
  0x21   : > { %p698_p9 = pnand %p697_p7, %p693_p13 }
  0x23   : > { %701 = shalt.err (!%p698_p9)
}
  0x24   : > { %611 = dma.hbm_to_vmem [thread:$0]  (!%p881_p10), %s133_s6, 128, %s135_s8, %s123_s17  }
  0x25   : > { %143 = sbr.rel (%p848_p8) target bundleno = 611 (0x263), region = 28  ;;  %s898_s28 = sand.u32 (!%p848_p8), 1, %s779_s10  }
  0x26   : > { %s592_s30 = sshll.u32 (!%p848_p8), %s898_s28, 3  ;;  %s146_s3 = scalar_lea.sflag (!%p848_p8), [#allocation3], %s898_s28 }
  0x27   : > { %s149_s4 = scalar_lea.vmem (!%p848_p8), [#allocation2], %s592_s30 }
  0x2a   : > { %762 = dma.done.wait (%p835_p4), %s146_s3, 128  }
  0x2b   : > { %764 = vsyncadd (%p835_p4), %s146_s3, 4294967168 }
  0x2c   : > { %766 = dma.done.wait (%p40_p1), [#allocation6], 16  }
  0x2d   : > { %768 = vsyncadd (%p40_p1), [#allocation6], 4294967280  ;;  %vm178_vm0 = vcmask 261120   ;;  %v177_v0 = vld [vmem:[%s149_s4] sm:$0xff]  ;;  %v175_v1 = vld [vmem:[#allocation5] sm:$0x1]  ;;  %s505_s5 = scalar_lea.hbm %s946_s2, %s826_s13 }
  0x2e   : > { %v183_v2 = vsel %vm178_vm0, %v177_v0, 0  ;;  %v176_v3 = vmul.f32 0.17677669, %v175_v1  ;;  %v363_v8 = vand.u32 4294901760, %v177_v0  ;;  %vm331_vm1 = vcmask 57344   ;;  %s174_s6 = scalar_lea.vmem [#allocation7], %s898_s28 }
  0x2f   : > { %v200_v4 = vand.u32 4294901760, %v183_v2  ;;  %vm344_vm2 = vcmask 64512   ;;  %s507_s7 = sshll.u32 %s174_s6, 4  ;;  %s509_s8 = sshll.u32 %s505_s5, 4  ;;  %vm494_vm3 = vcmask 253952   ;;  %s508_s7 = int_to_ptr.vmem [resolvable:$true] %s507_s7  ;;  %s510_s8 = int_to_ptr.hbm [resolvable:$true] %s509_s8 }
  0x30   : > { %v180_v5 = vsel %vm178_vm0, %v176_v3, 0  ;;  %v390_v33 = vsub.f32 %v177_v0, %v363_v8  ;;  %s497_s14 = scalar_lea.sflag [#allocation4], %s898_s28  ;;  %s731_s17 = sshra.s32 %s510_s8, 4  ;;  %s732_s17 = int_to_ptr.hbm [resolvable:$true] %s731_s17 }
  0x31   : > { %v227_v6 = vsub.f32 %v183_v2, %v200_v4  ;;  %277 = vmatpush.xpose.msra.mxu3 %v200_v4  ;;  %201 = vmatpush.xpose.msra.mxu0 %v200_v4  ;;  %v202_v7 = vand.u32 4294901760, %v180_v5  ;;  %s733_s18 = scalar_lea.hbm %s732_s17, 1  ;;  %s737_s21 = scalar_lea.hbm %s946_s2, 2 }
  0x32   : > { %v391_v34 = vand.u32 4294901760, %v390_v33  ;;  %p734_p1 = scmp.ne.s32.totalorder %s732_s17, %s733_s18  ;;  %p738_p9 = scmp.lt.s32.totalorder %s732_s17, %s946_s2 }
  0x33   : > { %254 = vmatpush.xpose.msra.mxu2 %v227_v6  ;;  %v203_v9 = vsub.f32 %v180_v5, %v202_v7  ;;  %v228_v10 = vand.u32 4294901760, %v227_v6  ;;  %p739_p10 = scmp.lt.s32.totalorder %s737_s21, %s733_s18 }
  0x34   : > { %v392_v35 = vsub.f32 %v390_v33, %v391_v34  ;;  %p735_p4 = pnand %p734_p1, %p871_p3 }
  0x35   : > { %v229_v11 = vsub.f32 %v227_v6, %v228_v10  ;;  %v204_v12 = vand.u32 4294901760, %v203_v9  ;;  %303 = vmatpush.xpose.msrb.mxu0 %v228_v10  ;;  %p740_p2 = por %p739_p10, %p738_p9 }
  0x36   : > { %257 = vmatmul.f32.vlgmr.msra.gmra.mxu2 %v203_v9  ;;  %v393_v36 = vand.u32 4294901760, %v392_v35  ;;  %p736_p8 = pneg %p735_p4 }
  0x37   : > { %364 = vmatpush.msrb.mxu2 %v363_v8  ;;  %v230_v13 = vand.u32 4294901760, %v229_v11  ;;  %281 = vmatmul.f32.vlgmr.msra.gmra.mxu3 %v204_v12  ;;  %v205_v14 = vsub.f32 %v203_v9, %v204_v12 }
  0x38   : > { %394 = vmatpush.msrb.mxu3 %v393_v36  ;;  %p741_p11 = pnand %p740_p2, %p736_p8 }
  0x39   : > { %231 = vmatpush.xpose.msra.mxu1 %v230_v13  ;;  %v206_v15 = vand.u32 4294901760, %v205_v14  ;;  %466 = vmatpush.msra.mxu2 %v391_v34 }
  0x3a   : > { %488 = vmatpush.msra.mxu3 %v363_v8 }
  0x3b   : > { %207 = vmatmul.f32.vlgmr.msra.gmra.mxu0 %v206_v15 }
  0x3c   : > { %233 = vmatmul.f32.vlgmr.msra.gmra.mxu1 %v202_v7  ;;  %417 = vmatpush.msra.mxu0 %v390_v33 }
  0x3d   : > { %325 = vmatpush.xpose.msrb.mxu1 %v200_v4 }
  0x41   : > { %440 = vmatpush.msra.mxu1 %v363_v8 }
  0x43   : > { %305 = vmatmul.f32.vlgmr.msrb.gmra.mxu0 %v202_v7 }
  0x44   : > { %327 = vmatmul.f32.vlgmr.msrb.gmra.mxu1 %v202_v7 }
  0xb8   : > { %v208_v16 = vpop.f32.mrf.mxu0 }
  0xb9   : > { %v234_v17 = vpop.f32.mrf.mxu1  ;;  %v258_v18 = vpop.f32.mrf.mxu2 }
  0xba   : > { %v235_v19 = vadd.f32 %v234_v17, %v208_v16  ;;  %v282_v20 = vpop.f32.mrf.mxu3 }
  0xbc   : > { %v259_v21 = vadd.f32 %v258_v18, %v235_v19 }
  0xbe   : > { %v283_v22 = vadd.f32 %v282_v20, %v259_v21 }
  0xc0   : > { %v306_v23 = vpop.f32.mrf.mxu0 }
  0xc1   : > { %v307_v24 = vadd.f32 %v306_v23, %v283_v22  ;;  %v328_v25 = vpop.f32.mrf.mxu1 }
  0xc3   : > { %v329_v26 = vadd.f32 %v328_v25, %v307_v24 }
  0xc5   : > { %v332_v27 = vsel %vm331_vm1, %v329_v26, -inf }
  0xc6   : > { %333 = vmax.xlane.f32.xlu0 %v332_v27 }
 0x139   : > { %v334_v28 = vpop.xlane.xlu0 %333 }
 0x13a   : > { %v335_v29 = vsub.f32 %v329_v26, %v334_v28 }
 0x13c   : > { %v336_v30 = vmul.f32 1.442695, %v335_v29 }
 0x13e   : > { %653 = vpow2.f32 %v336_v30 }
 0x144   : > { %v654_v31 = vpop.eup %653 }
 0x145   : > { %v338_v32 = vsel %vm331_vm1, %v654_v31, 0.0 }
 0x146   : > { %339 = vadd.xlane.f32.xlu0 %v338_v32 }
 0x1b9   : > { %v340_v37 = vpop.xlane.xlu0 %339 }
 0x1ba   : > { %655 = vlog2.f32 %v340_v37 }
 0x1c0   : > { %v656_v38 = vpop.eup %655 }
 0x1c1   : > { %v342_v39 = vmul.f32 0.6931472, %v656_v38 }
 0x1c3   : > { %v343_v40 = vsub.f32 %v335_v29, %v342_v39 }
 0x1c5   : > { %v346_v41 = vsel %vm344_vm2, %v343_v40, 0 }
 0x1c6   : > { %v365_v42 = vand.u32 4294901760, %v346_v41 }
 0x1c8   : > { %v366_v43 = vsub.f32 %v346_v41, %v365_v42  ;;  %396 = vmatmul.f32.vlgmr.msrb.gmra.mxu3 %v365_v42 }
 0x1ca   : > { %420 = vmatmul.f32.vlgmr.msra.gmra.mxu0 %v366_v43  ;;  %v367_v44 = vand.u32 4294901760, %v366_v43 }
 0x1cc   : > { %444 = vmatmul.f32.vlgmr.msra.gmra.mxu1 %v367_v44  ;;  %v368_v45 = vsub.f32 %v366_v43, %v367_v44 }
 0x1ce   : > { %v369_v46 = vand.u32 4294901760, %v368_v45 }
 0x1d0   : > { %370 = vmatmul.f32.vlgmr.msrb.gmra.mxu2 %v369_v46  ;;  %490 = vmatmul.f32.vlgmr.msra.gmra.mxu3 %v365_v42 }
 0x1d8   : > { %468 = vmatmul.f32.vlgmr.msra.gmra.mxu2 %v365_v42 }
 0x247   : > { %v421_v50 = vpop.f32.mrf.mxu0 }
 0x249   : > { %v445_v52 = vpop.f32.mrf.mxu1 }
 0x24b   : > { %v397_v47 = vpop.f32.mrf.mxu3 }
 0x253   : > { %v371_v48 = vpop.f32.mrf.mxu2  ;;  %v491_v56 = vpop.f32.mrf.mxu3 }
 0x254   : > { %v398_v49 = vadd.f32 %v397_v47, %v371_v48 }
 0x256   : > { %v422_v51 = vadd.f32 %v421_v50, %v398_v49 }
 0x258   : > { %v446_v53 = vadd.f32 %v445_v52, %v422_v51 }
 0x25b   : > { %v469_v54 = vpop.f32.mrf.mxu2 }
 0x25c   : > { %v470_v55 = vadd.f32 %v469_v54, %v446_v53 }
 0x25e   : > { %v492_v57 = vadd.f32 %v491_v56, %v470_v55 }
 0x260   : > { %495 = vst.msk [vmem:[%s174_s6] sm:$0x1] %vm494_vm3, %v492_v57 }
 0x261   : > { %744 = shalt.err (!%p741_p11)
}
 0x262   : > { %602 = dma.vmem_to_hbm [thread:$0]  (%p871_p3), %s508_s7, 16, %s510_s8, %s497_s14  }
 0x263 PF: > { %s521_s25 = sand.u32 1, %s775_s9   ;;  %p952_p12 = scmp.ge.s32.totalorder %s787_s12, 2 }
 0x264   : > { %s522_s29 = scalar_lea.sflag [#allocation4], %s521_s25 }
 0x265   : > { %p613_p13 = pnand %p952_p12, %p840_p6 }
 0x267   : > { %p614_p0 = pneg %p613_p13 }
 0x269   : > { %770 = dma.done.wait (%p614_p0), %s522_s29, 16  }
 0x26a   : > { %772 = vsyncadd (%p614_p0), %s522_s29, 4294967280  ;;  %p16_p5 = scmp.ge.s32.totalorder %s858_s23, 4   ;;  %s953_s9 = smov %s779_s10 }
 0x26b   : > { %s954_s10 = smov %s783_s11  ;;  %s955_s11 = smov %s867_s26 }
 0x26c   : > { %s956_s12 = smov %s858_s23  ;;  %18 = sbr.rel (!%p16_p5) target bundleno = 6 (0x6), region = 77 }
 0x271   :  { %527 = vsyncpa [#allocation3], 1 }
 0x272   :  { %529 = vsyncpa [#allocation3 + $0x1], 1 }
 0x273   :  { %530 = vsyncpa [#allocation6], 1 }
 0x274   :  { %531 = vsyncpa [#allocation4], 1 }
 0x275   :  { %533 = vsyncpa [#allocation4 + $0x1], 1 }

</bundles_post_ra>
